<compile_context>
chip_gen: v6e
topology: v6e:2x2x1
jax: 0.10.0
libtpu: 0.0.40
codegen_flags: <defaults>
</compile_context>

<pallas_src>
import functools

import jax
import jax.numpy as jnp
import numpy as np
from jax.experimental import pallas as pl
from jax.experimental.pallas import tpu as pltpu

# ----------------------- config (mirrors argparse.Namespace) -----------------------
NFIELD = 10          # args.nfield
NFEAT = 100          # args.nfeat
DATA_NEMB = 8        # args.data_nemb
SQL_NEMB = 8         # args.sql_nemb
MOE_HID = 32         # args.moe_hid_layer_len  (expert hidden width)
GATE_HID = 32        # args.hid_layer_len      (gate hidden width)
OUTPUT_SIZE = 1      # args.output_size
K_EXPERTS = 8        # args.K
ALPHA = 1.5          # args.alpha (entmax alpha, nn.Parameter init value)
N_ITER_REF = 10      # PyTorch EntmaxBisect default
N_ITER_KERNEL = 7    # shortened serial XLU/VPU chain; renormalization absorbs residual
BATCH = 8

D_IN = NFIELD * DATA_NEMB   # expert input size (80)
G_IN = NFIELD * SQL_NEMB    # gate   input size (80) == D_IN -> gate-L1 rides the expert matmul
KH = K_EXPERTS * MOE_HID    # packed expert hidden width (256)
XIN_ROWS = 16               # B rows of x ++ 1 sql row, padded to one bf16 sublane tile
W1G_COLS = 384              # KH (256) ++ GATE_HID (32) padded up to 3*128 lanes

# fp32 params-slab layout: shape [SLAB_ROWS, KH]
SLAB_ROWS = 48
ROW_W2E = 0     # rows 0:8,   lanes 0:KH        gate-foldable block-diagonal w2 expansion
ROW_B1C = 8     # row 8,      lanes 0:KH        packed expert bias-1
ROW_BG1 = 9     # row 9,      lanes 0:GATE_HID  gate bias-1
ROW_BG2 = 10    # row 10,     lanes 0:K         gate bias-2
ROW_B2 = 11     # row 11,     lanes 0:K         expert bias-2 (output_size == 1)
ROW_WG2 = 16    # rows 16:48, lanes 0:K         gate W2 [GATE_HID, K]


# ----------------------------- shared math helpers ---------------------------------
def _entmax_power(x, inv):
    # x >= 0 by construction (post-clamp).
    # alpha == 1.5  =>  inv == 2.0  =>  plain VPU multiply (no EUP transcendentals).
    # TODO(synk): alpha is a trainable nn.Parameter in PyTorch; it is baked in at trace
    #             time here — thread it in as an SMEM scalar if it can ever change.
    if inv == 2.0:
        return x * x
    # fallback for non-1.5 alpha: pow via exp/log with a zero guard (EUP path).
    return jnp.where(x > 0.0, jnp.exp(inv * jnp.log(jnp.maximum(x, 1e-30))), 0.0)


def _entmax_bisect_lastdim(logits, n_iter):
    """EntmaxBisect_function._entmax_bisect_ with dim=-1, ensure_sum_one=True."""
    am1 = ALPHA - 1.0
    inv = 1.0 / am1
    d = logits.shape[-1]
    X = logits * am1
    max_val = jnp.max(X, axis=-1, keepdims=True)
    tau_lo = max_val - 1.0                      # 1 ** (alpha - 1)
    tau_hi = max_val - (1.0 / d) ** am1         # trace-time constant for alpha == 1.5
    f_lo = jnp.sum(_entmax_power(jnp.maximum(X - tau_lo, 0.0), inv),
                   axis=-1, keepdims=True) - 1.0
    dm = tau_hi - tau_lo
    p_m = jnp.zeros_like(X)
    for _ in range(n_iter):                     # statically unrolled bisection
        dm = dm * 0.5
        tau_m = tau_lo + dm
        p_m = _entmax_power(jnp.maximum(X - tau_m, 0.0), inv)
        f_m = jnp.sum(p_m, axis=-1, keepdims=True) - 1.0
        mask = (f_m * f_lo) >= 0.0
        tau_lo = jnp.where(mask, tau_m, tau_lo)
    return p_m / jnp.sum(p_m, axis=-1, keepdims=True)


def _sigmoid(x):
    return 1.0 / (1.0 + jnp.exp(-x))


# --------------------------------- fused Pallas kernel ------------------------------
def fused_moe_kernel(xin_ref, w1g_ref, slab_ref, out_ref, *, nb):
    # ---- ONE bf16 MXU matmul covers expert layer-1 (all K experts) AND gate layer-1 ----
    # xin rows 0:nb are x batch rows, row nb is the sql row; columns 0:KH are the packed
    # expert W1, columns KH:KH+GATE_HID are the gate W1, the rest is zero padding.
    big = jnp.dot(xin_ref[...], w1g_ref[...],
                  preferred_element_type=jnp.float32)                       # [16, 384] f32

    # ---- gate network + entmax ----
    # TODO(synk): SparseVerticalGate is not defined in the source file; assumed
    #             Linear -> ReLU -> Dropout(eval no-op) -> Linear.
    hg = jnp.maximum(big[nb:nb + 1, KH:KH + GATE_HID]
                     + slab_ref[ROW_BG1:ROW_BG1 + 1, :GATE_HID], 0.0)       # [1, GATE_HID]
    logits = (jnp.dot(hg, slab_ref[ROW_WG2:ROW_WG2 + GATE_HID, :K_EXPERTS],
                      preferred_element_type=jnp.float32)
              + slab_ref[ROW_BG2:ROW_BG2 + 1, :K_EXPERTS])                  # [1, K]
    gate = _entmax_bisect_lastdim(logits, N_ITER_KERNEL)                    # [1, K]

    # ---- experts hidden (all K at once): rows 0:nb, lanes 0:KH ----
    # TODO(synk): initialize_expert(args) is not defined in the source file; assumed
    #             MLP expert: flatten -> Linear(D, H) -> ReLU -> Linear(H, output_size).
    h = jnp.maximum(big[:nb, :KH] + slab_ref[ROW_B1C:ROW_B1C + 1, :KH], 0.0)  # [B, KH]

    # Fold the gate into the (block-diagonal) second projection:
    #   gw2[0, k*H + j] = gate[k] * w2[k, j, 0]   via   [1,K] @ [K, K*H].
    gw2 = jnp.dot(gate, slab_ref[ROW_W2E:ROW_W2E + K_EXPERTS, :KH],
                  preferred_element_type=jnp.float32)                       # [1, KH]
    bias = jnp.sum(gate * slab_ref[ROW_B2:ROW_B2 + 1, :K_EXPERTS],
                   axis=-1, keepdims=True)                                  # [1, 1]

    # MoE combine: VPU multiply + lane reduction (no degenerate N=1 MXU matmul).
    combined = jnp.sum(h * gw2, axis=-1, keepdims=True)                     # [B, 1]
    out_ref[...] = _sigmoid(combined + bias)


# --------------------------- one-time parameter packing -----------------------------
def prepare_packed_params(params):
    """Hoisted out of the forward path: build the bf16 weight slab and fp32 params slab."""
    assert OUTPUT_SIZE == 1  # TODO(synk): w2e packing hard-assumes output_size == 1.

    # w1c[d, k*H + j] = w1[k, d, j]  -> [D_IN, KH]; concat gate W1 and pad lanes to 384.
    w1c = jnp.transpose(params["w1"], (1, 0, 2)).reshape(D_IN, KH)
    w1g = jnp.concatenate([w1c, params["wg1"]], axis=1)                     # [80, 288]
    w1g = jnp.pad(w1g, ((0, 0), (0, W1G_COLS - KH - GATE_HID)))             # [80, 384]
    w1g = w1g.astype(jnp.bfloat16)                                          # bf16 MXU operand

    # Block-diagonal expansion: w2e[m, k*H + j] = (m == k) * w2[k, j, 0].
    w2_mat = params["w2"][:, :, 0]                                          # [K, H]
    w2e = (jnp.eye(K_EXPERTS, dtype=jnp.float32)[:, :, None]
           * w2_mat[None, :, :]).reshape(K_EXPERTS, KH)                     # [K, KH]

    slab = jnp.zeros((SLAB_ROWS, KH), jnp.float32)
    slab = slab.at[ROW_W2E:ROW_W2E + K_EXPERTS, :].set(w2e)
    slab = slab.at[ROW_B1C, :].set(params["b1"].reshape(KH))
    slab = slab.at[ROW_BG1, :GATE_HID].set(params["bg1"].reshape(GATE_HID))
    slab = slab.at[ROW_BG2, :K_EXPERTS].set(params["bg2"].reshape(K_EXPERTS))
    slab = slab.at[ROW_B2, :K_EXPERTS].set(params["b2"].reshape(K_EXPERTS))
    slab = slab.at[ROW_WG2:ROW_WG2 + GATE_HID, :K_EXPERTS].set(params["wg2"])

    return {
        "input_emb": params["input_emb"],
        "sql_emb": params["sql_emb"],
        "w1g": w1g,
        "slab": slab,
    }


# ------------------------------------ wrapper ---------------------------------------
@jax.jit
def onnx_general_forward(packed, x_ids, sql_ids):
    """x_ids: [B, nfield] int32, sql_ids: [1, nfield] int32 -> y: [B] float32."""
    B = x_ids.shape[0]
    assert B + 1 <= XIN_ROWS

    # Embedding gathers (plain-JAX glue).
    # TODO(synk): fusing these gathers in-kernel (scalar-prefetch ids + one-hot MXU gather)
    #             was skipped: the [B,nfield]->[B,nfield*demb] relayout has no cheap
    #             in-kernel form at these sizes.
    x_flat = packed["input_emb"][x_ids].reshape(B, D_IN)                    # [B, 80]
    sql_flat = packed["sql_emb"][sql_ids].reshape(sql_ids.shape[0], G_IN)   # [1, 80]

    # Stack x rows + the sql row into one bf16 activation block (single input DMA).
    xin = jnp.zeros((XIN_ROWS, D_IN), jnp.bfloat16)
    xin = xin.at[:B, :].set(x_flat.astype(jnp.bfloat16))
    xin = xin.at[B, :].set(sql_flat[0].astype(jnp.bfloat16))

    vmem = pl.BlockSpec(memory_space=pltpu.MemorySpace.VMEM)
    cost = pl.CostEstimate(
        flops=(2 * XIN_ROWS * D_IN * W1G_COLS        # fused expert/gate layer-1 matmul
               + 2 * GATE_HID * K_EXPERTS            # gate layer-2
               + 2 * K_EXPERTS * KH                  # gate-folded w2 expansion
               + 3 * B * KH),                        # MoE combine
        transcendentals=2 * B + 2 * K_EXPERTS,
        bytes_accessed=(XIN_ROWS * D_IN * 2 + D_IN * W1G_COLS * 2
                        + SLAB_ROWS * KH * 4 + B * OUTPUT_SIZE * 4),
    )

    out = pl.pallas_call(
        functools.partial(fused_moe_kernel, nb=B),
        out_shape=jax.ShapeDtypeStruct((B, OUTPUT_SIZE), jnp.float32),
        in_specs=[vmem, vmem, vmem],
        out_specs=vmem,
        cost_estimate=cost,
    )(xin, packed["w1g"], packed["slab"])

    return out.reshape(-1)                                                  # squeeze(-1) -> [B]


# ------------------------------ pure-JAX reference ----------------------------------
def reference_forward(params, x_ids, sql_ids):
    B = x_ids.shape[0]
    x_flat = params["input_emb"][x_ids].reshape(B, D_IN)
    sql_flat = params["sql_emb"][sql_ids].reshape(sql_ids.shape[0], G_IN)
    h = jnp.maximum(sql_flat @ params["wg1"] + params["bg1"], 0.0)
    logits = h @ params["wg2"] + params["bg2"]
    gate = _entmax_bisect_lastdim(logits, N_ITER_REF)                       # [1, K]
    outs = []
    for k in range(K_EXPERTS):
        hh = jnp.maximum(x_flat @ params["w1"][k] + params["b1"][k, 0], 0.0)
        outs.append(hh @ params["w2"][k] + params["b2"][k, 0])              # [B, 1]
    stacked = jnp.stack(outs, axis=1)                                       # [B, K, 1]
    comb = jnp.sum(gate.reshape(1, K_EXPERTS, 1) * stacked, axis=1)         # [B, 1]
    return _sigmoid(comb.reshape(-1))


# ---------------------------------- param init ---------------------------------------
def init_params(key):
    def xavier(k, shape, fan_in, fan_out):
        bound = float(np.sqrt(6.0 / (fan_in + fan_out)))
        return jax.random.uniform(k, shape, jnp.float32, -bound, bound)

    ks = jax.random.split(key, 10)
    return {
        "input_emb": xavier(ks[0], (NFEAT, DATA_NEMB), NFEAT, DATA_NEMB),
        "sql_emb":   xavier(ks[1], (NFIELD + NFEAT + 1, SQL_NEMB), NFIELD + NFEAT + 1, SQL_NEMB),
        "wg1": xavier(ks[2], (G_IN, GATE_HID), G_IN, GATE_HID),
        "bg1": jnp.zeros((1, GATE_HID), jnp.float32),
        "wg2": xavier(ks[3], (GATE_HID, K_EXPERTS), GATE_HID, K_EXPERTS),
        "bg2": jnp.zeros((1, K_EXPERTS), jnp.float32),
        "w1": xavier(ks[4], (K_EXPERTS, D_IN, MOE_HID), D_IN, MOE_HID),
        "b1": 0.01 * xavier(ks[5], (K_EXPERTS, 1, MOE_HID), 1, MOE_HID),
        "w2": xavier(ks[6], (K_EXPERTS, MOE_HID, OUTPUT_SIZE), MOE_HID, OUTPUT_SIZE),
        "b2": 0.01 * xavier(ks[7], (K_EXPERTS, 1, OUTPUT_SIZE), 1, OUTPUT_SIZE),
    }


# --------------------------------------- main ----------------------------------------
if __name__ == "__main__":
    key = jax.random.PRNGKey(0)
    kp, kx, ks = jax.random.split(key, 3)
    params = init_params(kp)
    packed = jax.tree_util.tree_map(jax.block_until_ready,
                                    prepare_packed_params(params))  # packing hoisted: done once

    x_ids = jax.random.randint(kx, (BATCH, NFIELD), 0, NFEAT, dtype=jnp.int32)
    sql_ids = jax.random.randint(ks, (1, NFIELD), 0, NFIELD + NFEAT + 1, dtype=jnp.int32)

    y = jax.block_until_ready(onnx_general_forward(packed, x_ids, sql_ids))
    y_ref = jax.block_until_ready(reference_forward(params, x_ids, sql_ids))

    assert y.shape == (BATCH,)
    np.testing.assert_allclose(np.asarray(y), np.asarray(y_ref), atol=1e-2, rtol=1e-2)

    print("KERNEL_OK")
</pallas_src>

<mosaic_0001>
module attributes {stable_mosaic.version = 11 : i64} {
  func.func @fused_moe_kernel(%arg0: memref<16x80xbf16, #tpu.memory_space<vmem>>, %arg1: memref<80x384xbf16, #tpu.memory_space<vmem>>, %arg2: memref<48x256xf32, #tpu.memory_space<vmem>>, %arg3: memref<8x1xf32, #tpu.memory_space<vmem>>) attributes {dimension_semantics = [], scalar_prefetch = 0 : i64, scratch_operands = 0 : i64, tpu.core_type = #tpu.core_type<tc>} {
    %c0 = arith.constant 0 : index
    %c0_0 = arith.constant 0 : index
    %0 = vector.load %arg0[%c0, %c0_0] : memref<16x80xbf16, #tpu.memory_space<vmem>>, vector<16x80xbf16>
    %c0_1 = arith.constant 0 : index
    %c0_2 = arith.constant 0 : index
    %1 = vector.load %arg1[%c0_1, %c0_2] : memref<80x384xbf16, #tpu.memory_space<vmem>>, vector<80x384xbf16>
    %cst = arith.constant dense<0.000000e+00> : vector<16x384xf32>
    %2 = tpu.matmul %0, %1, %cst {dimension_numbers = #tpu.dot_dimension_numbers<[1], [0], [0], [1], [0, 0, 1, 1], [], []>} : vector<16x80xbf16>, vector<80x384xbf16>, vector<16x384xf32> -> vector<16x384xf32>
    %3 = vector.extract_strided_slice %2 {offsets = [8, 256], sizes = [1, 32], strides = [1, 1]} : vector<16x384xf32> to vector<1x32xf32>
    %c9 = arith.constant 9 : index
    %c0_3 = arith.constant 0 : index
    %4 = vector.load %arg2[%c9, %c0_3] : memref<48x256xf32, #tpu.memory_space<vmem>>, vector<1x32xf32>
    %5 = arith.addf %3, %4 : vector<1x32xf32>
    %cst_4 = arith.constant 0.000000e+00 : f32
    %6 = vector.broadcast %cst_4 : f32 to vector<1x32xf32>
    %7 = arith.maximumf %5, %6 : vector<1x32xf32>
    %c16 = arith.constant 16 : index
    %c0_5 = arith.constant 0 : index
    %8 = vector.load %arg2[%c16, %c0_5] : memref<48x256xf32, #tpu.memory_space<vmem>>, vector<32x8xf32>
    %cst_6 = arith.constant dense<0.000000e+00> : vector<1x8xf32>
    %9 = tpu.matmul %7, %8, %cst_6 {dimension_numbers = #tpu.dot_dimension_numbers<[1], [0], [0], [1], [0, 0, 1, 1], [], []>} : vector<1x32xf32>, vector<32x8xf32>, vector<1x8xf32> -> vector<1x8xf32>
    %c10 = arith.constant 10 : index
    %c0_7 = arith.constant 0 : index
    %10 = vector.load %arg2[%c10, %c0_7] : memref<48x256xf32, #tpu.memory_space<vmem>>, vector<1x8xf32>
    %11 = arith.addf %9, %10 : vector<1x8xf32>
    %cst_8 = arith.constant 5.000000e-01 : f32
    %12 = vector.broadcast %cst_8 : f32 to vector<1x8xf32>
    %13 = arith.mulf %11, %12 : vector<1x8xf32>
    %cst_9 = arith.constant dense<0xFF800000> : vector<1xf32>
    %14 = vector.multi_reduction <maximumf>, %13, %cst_9 [1] : vector<1x8xf32> to vector<1xf32>
    %15 = vector.shape_cast %14 : vector<1xf32> to vector<1x1xf32>
    %cst_10 = arith.constant 1.000000e+00 : f32
    %16 = vector.broadcast %cst_10 : f32 to vector<1x1xf32>
    %17 = arith.subf %15, %16 : vector<1x1xf32>
    %cst_11 = arith.constant 0.353553385 : f32
    %18 = vector.broadcast %cst_11 : f32 to vector<1x1xf32>
    %19 = arith.subf %15, %18 : vector<1x1xf32>
    %20 = vector.broadcast %17 : vector<1x1xf32> to vector<1x8xf32>
    %21 = arith.subf %13, %20 : vector<1x8xf32>
    %cst_12 = arith.constant 0.000000e+00 : f32
    %22 = vector.broadcast %cst_12 : f32 to vector<1x8xf32>
    %23 = arith.maximumf %21, %22 : vector<1x8xf32>
    %24 = arith.mulf %23, %23 : vector<1x8xf32>
    %cst_13 = arith.constant dense<0.000000e+00> : vector<1xf32>
    %25 = vector.multi_reduction <add>, %24, %cst_13 [1] : vector<1x8xf32> to vector<1xf32>
    %26 = vector.shape_cast %25 : vector<1xf32> to vector<1x1xf32>
    %cst_14 = arith.constant 1.000000e+00 : f32
    %27 = vector.broadcast %cst_14 : f32 to vector<1x1xf32>
    %28 = arith.subf %26, %27 : vector<1x1xf32>
    %29 = arith.subf %19, %17 : vector<1x1xf32>
    %cst_15 = arith.constant 5.000000e-01 : f32
    %30 = vector.broadcast %cst_15 : f32 to vector<1x1xf32>
    %31 = arith.mulf %29, %30 : vector<1x1xf32>
    %32 = arith.addf %17, %31 : vector<1x1xf32>
    %33 = vector.broadcast %32 : vector<1x1xf32> to vector<1x8xf32>
    %34 = arith.subf %13, %33 : vector<1x8xf32>
    %cst_16 = arith.constant 0.000000e+00 : f32
    %35 = vector.broadcast %cst_16 : f32 to vector<1x8xf32>
    %36 = arith.maximumf %34, %35 : vector<1x8xf32>
    %37 = arith.mulf %36, %36 : vector<1x8xf32>
    %cst_17 = arith.constant dense<0.000000e+00> : vector<1xf32>
    %38 = vector.multi_reduction <add>, %37, %cst_17 [1] : vector<1x8xf32> to vector<1xf32>
    %39 = vector.shape_cast %38 : vector<1xf32> to vector<1x1xf32>
    %cst_18 = arith.constant 1.000000e+00 : f32
    %40 = vector.broadcast %cst_18 : f32 to vector<1x1xf32>
    %41 = arith.subf %39, %40 : vector<1x1xf32>
    %42 = arith.mulf %41, %28 : vector<1x1xf32>
    %cst_19 = arith.constant 0.000000e+00 : f32
    %43 = vector.broadcast %cst_19 : f32 to vector<1x1xf32>
    %44 = arith.cmpf oge, %42, %43 : vector<1x1xf32>
    %45 = arith.select %44, %32, %17 : vector<1x1xi1>, vector<1x1xf32>
    %cst_20 = arith.constant 5.000000e-01 : f32
    %46 = vector.broadcast %cst_20 : f32 to vector<1x1xf32>
    %47 = arith.mulf %31, %46 : vector<1x1xf32>
    %48 = arith.addf %45, %47 : vector<1x1xf32>
    %49 = vector.broadcast %48 : vector<1x1xf32> to vector<1x8xf32>
    %50 = arith.subf %13, %49 : vector<1x8xf32>
    %cst_21 = arith.constant 0.000000e+00 : f32
    %51 = vector.broadcast %cst_21 : f32 to vector<1x8xf32>
    %52 = arith.maximumf %50, %51 : vector<1x8xf32>
    %53 = arith.mulf %52, %52 : vector<1x8xf32>
    %cst_22 = arith.constant dense<0.000000e+00> : vector<1xf32>
    %54 = vector.multi_reduction <add>, %53, %cst_22 [1] : vector<1x8xf32> to vector<1xf32>
    %55 = vector.shape_cast %54 : vector<1xf32> to vector<1x1xf32>
    %cst_23 = arith.constant 1.000000e+00 : f32
    %56 = vector.broadcast %cst_23 : f32 to vector<1x1xf32>
    %57 = arith.subf %55, %56 : vector<1x1xf32>
    %58 = arith.mulf %57, %28 : vector<1x1xf32>
    %cst_24 = arith.constant 0.000000e+00 : f32
    %59 = vector.broadcast %cst_24 : f32 to vector<1x1xf32>
    %60 = arith.cmpf oge, %58, %59 : vector<1x1xf32>
    %61 = arith.select %60, %48, %45 : vector<1x1xi1>, vector<1x1xf32>
    %cst_25 = arith.constant 5.000000e-01 : f32
    %62 = vector.broadcast %cst_25 : f32 to vector<1x1xf32>
    %63 = arith.mulf %47, %62 : vector<1x1xf32>
    %64 = arith.addf %61, %63 : vector<1x1xf32>
    %65 = vector.broadcast %64 : vector<1x1xf32> to vector<1x8xf32>
    %66 = arith.subf %13, %65 : vector<1x8xf32>
    %cst_26 = arith.constant 0.000000e+00 : f32
    %67 = vector.broadcast %cst_26 : f32 to vector<1x8xf32>
    %68 = arith.maximumf %66, %67 : vector<1x8xf32>
    %69 = arith.mulf %68, %68 : vector<1x8xf32>
    %cst_27 = arith.constant dense<0.000000e+00> : vector<1xf32>
    %70 = vector.multi_reduction <add>, %69, %cst_27 [1] : vector<1x8xf32> to vector<1xf32>
    %71 = vector.shape_cast %70 : vector<1xf32> to vector<1x1xf32>
    %cst_28 = arith.constant 1.000000e+00 : f32
    %72 = vector.broadcast %cst_28 : f32 to vector<1x1xf32>
    %73 = arith.subf %71, %72 : vector<1x1xf32>
    %74 = arith.mulf %73, %28 : vector<1x1xf32>
    %cst_29 = arith.constant 0.000000e+00 : f32
    %75 = vector.broadcast %cst_29 : f32 to vector<1x1xf32>
    %76 = arith.cmpf oge, %74, %75 : vector<1x1xf32>
    %77 = arith.select %76, %64, %61 : vector<1x1xi1>, vector<1x1xf32>
    %cst_30 = arith.constant 5.000000e-01 : f32
    %78 = vector.broadcast %cst_30 : f32 to vector<1x1xf32>
    %79 = arith.mulf %63, %78 : vector<1x1xf32>
    %80 = arith.addf %77, %79 : vector<1x1xf32>
    %81 = vector.broadcast %80 : vector<1x1xf32> to vector<1x8xf32>
    %82 = arith.subf %13, %81 : vector<1x8xf32>
    %cst_31 = arith.constant 0.000000e+00 : f32
    %83 = vector.broadcast %cst_31 : f32 to vector<1x8xf32>
    %84 = arith.maximumf %82, %83 : vector<1x8xf32>
    %85 = arith.mulf %84, %84 : vector<1x8xf32>
    %cst_32 = arith.constant dense<0.000000e+00> : vector<1xf32>
    %86 = vector.multi_reduction <add>, %85, %cst_32 [1] : vector<1x8xf32> to vector<1xf32>
    %87 = vector.shape_cast %86 : vector<1xf32> to vector<1x1xf32>
    %cst_33 = arith.constant 1.000000e+00 : f32
    %88 = vector.broadcast %cst_33 : f32 to vector<1x1xf32>
    %89 = arith.subf %87, %88 : vector<1x1xf32>
    %90 = arith.mulf %89, %28 : vector<1x1xf32>
    %cst_34 = arith.constant 0.000000e+00 : f32
    %91 = vector.broadcast %cst_34 : f32 to vector<1x1xf32>
    %92 = arith.cmpf oge, %90, %91 : vector<1x1xf32>
    %93 = arith.select %92, %80, %77 : vector<1x1xi1>, vector<1x1xf32>
    %cst_35 = arith.constant 5.000000e-01 : f32
    %94 = vector.broadcast %cst_35 : f32 to vector<1x1xf32>
    %95 = arith.mulf %79, %94 : vector<1x1xf32>
    %96 = arith.addf %93, %95 : vector<1x1xf32>
    %97 = vector.broadcast %96 : vector<1x1xf32> to vector<1x8xf32>
    %98 = arith.subf %13, %97 : vector<1x8xf32>
    %cst_36 = arith.constant 0.000000e+00 : f32
    %99 = vector.broadcast %cst_36 : f32 to vector<1x8xf32>
    %100 = arith.maximumf %98, %99 : vector<1x8xf32>
    %101 = arith.mulf %100, %100 : vector<1x8xf32>
    %cst_37 = arith.constant dense<0.000000e+00> : vector<1xf32>
    %102 = vector.multi_reduction <add>, %101, %cst_37 [1] : vector<1x8xf32> to vector<1xf32>
    %103 = vector.shape_cast %102 : vector<1xf32> to vector<1x1xf32>
    %cst_38 = arith.constant 1.000000e+00 : f32
    %104 = vector.broadcast %cst_38 : f32 to vector<1x1xf32>
    %105 = arith.subf %103, %104 : vector<1x1xf32>
    %106 = arith.mulf %105, %28 : vector<1x1xf32>
    %cst_39 = arith.constant 0.000000e+00 : f32
    %107 = vector.broadcast %cst_39 : f32 to vector<1x1xf32>
    %108 = arith.cmpf oge, %106, %107 : vector<1x1xf32>
    %109 = arith.select %108, %96, %93 : vector<1x1xi1>, vector<1x1xf32>
    %cst_40 = arith.constant 5.000000e-01 : f32
    %110 = vector.broadcast %cst_40 : f32 to vector<1x1xf32>
    %111 = arith.mulf %95, %110 : vector<1x1xf32>
    %112 = arith.addf %109, %111 : vector<1x1xf32>
    %113 = vector.broadcast %112 : vector<1x1xf32> to vector<1x8xf32>
    %114 = arith.subf %13, %113 : vector<1x8xf32>
    %cst_41 = arith.constant 0.000000e+00 : f32
    %115 = vector.broadcast %cst_41 : f32 to vector<1x8xf32>
    %116 = arith.maximumf %114, %115 : vector<1x8xf32>
    %117 = arith.mulf %116, %116 : vector<1x8xf32>
    %cst_42 = arith.constant dense<0.000000e+00> : vector<1xf32>
    %118 = vector.multi_reduction <add>, %117, %cst_42 [1] : vector<1x8xf32> to vector<1xf32>
    %119 = vector.shape_cast %118 : vector<1xf32> to vector<1x1xf32>
    %cst_43 = arith.constant 1.000000e+00 : f32
    %120 = vector.broadcast %cst_43 : f32 to vector<1x1xf32>
    %121 = arith.subf %119, %120 : vector<1x1xf32>
    %122 = arith.mulf %121, %28 : vector<1x1xf32>
    %cst_44 = arith.constant 0.000000e+00 : f32
    %123 = vector.broadcast %cst_44 : f32 to vector<1x1xf32>
    %124 = arith.cmpf oge, %122, %123 : vector<1x1xf32>
    %125 = arith.select %124, %112, %109 : vector<1x1xi1>, vector<1x1xf32>
    %cst_45 = arith.constant 5.000000e-01 : f32
    %126 = vector.broadcast %cst_45 : f32 to vector<1x1xf32>
    %127 = arith.mulf %111, %126 : vector<1x1xf32>
    %128 = arith.addf %125, %127 : vector<1x1xf32>
    %129 = vector.broadcast %128 : vector<1x1xf32> to vector<1x8xf32>
    %130 = arith.subf %13, %129 : vector<1x8xf32>
    %cst_46 = arith.constant 0.000000e+00 : f32
    %131 = vector.broadcast %cst_46 : f32 to vector<1x8xf32>
    %132 = arith.maximumf %130, %131 : vector<1x8xf32>
    %133 = arith.mulf %132, %132 : vector<1x8xf32>
    %cst_47 = arith.constant dense<0.000000e+00> : vector<1xf32>
    %134 = vector.multi_reduction <add>, %133, %cst_47 [1] : vector<1x8xf32> to vector<1xf32>
    %135 = vector.shape_cast %134 : vector<1xf32> to vector<1x1xf32>
    %136 = vector.broadcast %135 : vector<1x1xf32> to vector<1x8xf32>
    %137 = arith.divf %133, %136 : vector<1x8xf32>
    %138 = vector.extract_strided_slice %2 {offsets = [0, 0], sizes = [8, 256], strides = [1, 1]} : vector<16x384xf32> to vector<8x256xf32>
    %c8 = arith.constant 8 : index
    %c0_48 = arith.constant 0 : index
    %139 = vector.load %arg2[%c8, %c0_48] : memref<48x256xf32, #tpu.memory_space<vmem>>, vector<1x256xf32>
    %140 = vector.broadcast %139 : vector<1x256xf32> to vector<8x256xf32>
    %141 = arith.addf %138, %140 : vector<8x256xf32>
    %cst_49 = arith.constant 0.000000e+00 : f32
    %142 = vector.broadcast %cst_49 : f32 to vector<8x256xf32>
    %143 = arith.maximumf %141, %142 : vector<8x256xf32>
    %c0_50 = arith.constant 0 : index
    %c0_51 = arith.constant 0 : index
    %144 = vector.load %arg2[%c0_50, %c0_51] : memref<48x256xf32, #tpu.memory_space<vmem>>, vector<8x256xf32>
    %cst_52 = arith.constant dense<0.000000e+00> : vector<1x256xf32>
    %145 = tpu.matmul %137, %144, %cst_52 {dimension_numbers = #tpu.dot_dimension_numbers<[1], [0], [0], [1], [0, 0, 1, 1], [], []>} : vector<1x8xf32>, vector<8x256xf32>, vector<1x256xf32> -> vector<1x256xf32>
    %c11 = arith.constant 11 : index
    %c0_53 = arith.constant 0 : index
    %146 = vector.load %arg2[%c11, %c0_53] : memref<48x256xf32, #tpu.memory_space<vmem>>, vector<1x8xf32>
    %147 = arith.mulf %137, %146 : vector<1x8xf32>
    %cst_54 = arith.constant dense<0.000000e+00> : vector<1xf32>
    %148 = vector.multi_reduction <add>, %147, %cst_54 [1] : vector<1x8xf32> to vector<1xf32>
    %149 = vector.shape_cast %148 : vector<1xf32> to vector<1x1xf32>
    %150 = vector.broadcast %145 : vector<1x256xf32> to vector<8x256xf32>
    %151 = arith.mulf %143, %150 : vector<8x256xf32>
    %cst_55 = arith.constant dense<0.000000e+00> : vector<8xf32>
    %152 = vector.multi_reduction <add>, %151, %cst_55 [1] : vector<8x256xf32> to vector<8xf32>
    %153 = vector.shape_cast %152 : vector<8xf32> to vector<8x1xf32>
    %154 = vector.broadcast %149 : vector<1x1xf32> to vector<8x1xf32>
    %155 = arith.addf %153, %154 : vector<8x1xf32>
    %cst_56 = arith.constant 0.000000e+00 : f32
    %156 = vector.broadcast %cst_56 : f32 to vector<8x1xf32>
    %157 = arith.subf %156, %155 : vector<8x1xf32>
    %158 = math.exp %157 : vector<8x1xf32>
    %cst_57 = arith.constant 1.000000e+00 : f32
    %159 = vector.broadcast %cst_57 : f32 to vector<8x1xf32>
    %160 = arith.addf %159, %158 : vector<8x1xf32>
    %cst_58 = arith.constant 1.000000e+00 : f32
    %161 = vector.broadcast %cst_58 : f32 to vector<8x1xf32>
    %162 = arith.divf %161, %160 : vector<8x1xf32>
    %c0_59 = arith.constant 0 : index
    %c0_60 = arith.constant 0 : index
    %163 = vector.load %arg3[%c0_59, %c0_60] : memref<8x1xf32, #tpu.memory_space<vmem>>, vector<8x1xf32>
    tpu.vector_store %arg3[%c0_59, %c0_60], %162 {strides = array<i32>} : memref<8x1xf32, #tpu.memory_space<vmem>>, vector<8x1xf32>,
    return
  }
}

</mosaic_0001>

<bundles_post_ra>
// kernel: onnx_general_forward.1
= control target key start
LH: loop header
LB: loop body
LE: loop exit
PB: predicated region body
PF: predicated region fallthrough
CT: control target
= control target key end

     0   :  { %v611_v0 = vmov 0.0   ;;  %vm612_vm0 = vmmov 0   ;;  %v613_v2 = vmov 0   ;;  %vm122_vm1 = vcmask 654336   ;;  %s744_s1 = inlined_call_operand.vmem [shape: bf16[80,384], index: 1, kind: input, shape index: {}]   ;;  %s745_s0 = inlined_call_operand.vmem [shape: bf16[16,80], index: 0, kind: input, shape index: {}]   ;;  %s746_s2 = inlined_call_operand.vmem [shape: f32[48,256], index: 2, kind: input, shape index: {}]   ;;  %s747_s3 = inlined_call_operand.vmem [shape: f32[8,1], index: 3, kind: output, shape index: {}]  }
   0x1   :  { %556 = vmatprep.subr.bf16.mxu1 %v611_v0  ;;  %v584_v1 = vld [vmem:[%s744_s1 + $0x68] ss:$12 sps:$4 sm:$0xff]   ;;  %566 = vmatprep.mubr.msk.bf16.mxu1 %vm612_vm0, %v611_v0  ;;  %v585_v3 = vld [vmem:[%s744_s1 + $0x50] ss:$12 sps:$4 sm:$0xff]   ;;  %v586_v4 = vld [vmem:[%s744_s1 + $0x38] ss:$12 sps:$4 sm:$0xff]  }
   0x2   :  { %158 = vmatprep.mubr.bf16.mxu0 %v613_v2  ;;  %557 = vmatpush3.bf16.msra.mxu1 %v584_v1  ;;  %v590_v5 = vld [vmem:[%s744_s1 + $0x64] ss:$12 sps:$4 sm:$0xff]   ;;  %v592_v6 = vld [vmem:[%s744_s1 + $0x60] ss:$12 sps:$4 sm:$0xff]   ;;  %v595_v9 = vld [vmem:[%s744_s1 + $0x48] ss:$12 sps:$4 sm:$0xff]  }
   0x3   :  { %558 = vmatprep.subr.bf16.mxu1 %v611_v0  ;;  %132 = vmatprep.subr.bf16.mxu0 %v590_v5  ;;  %v593_v7 = vld [vmem:[%s744_s1 + $0x4c] ss:$12 sps:$4 sm:$0xff]   ;;  %v596_v10 = vld [vmem:[%s744_s1 + $0x34] ss:$12 sps:$4 sm:$0xff]   ;;  %v598_v11 = vld [vmem:[%s744_s1 + $0x30] ss:$12 sps:$4 sm:$0xff]  }
   0x4   :  { %v587_v8 = vld [vmem:[%s744_s1 + $0x20] ss:$12 sps:$4 sm:$0xff]   ;;  %133 = vmatpush1.bf16.msra.mxu0 %v592_v6  ;;  %v588_v12 = vld [vmem:[%s744_s1 + $0x8] ss:$12 sps:$4 sm:$0xff]   ;;  %v601_v15 = vld [vmem:[%s744_s1 + $0x18] ss:$12 sps:$4 sm:$0xff]  }
   0x5   :  { %134 = vmatprep.subr.bf16.mxu0 %v593_v7  ;;  %v599_v13 = vld [vmem:[%s744_s1 + $0x1c] ss:$12 sps:$4 sm:$0xff]   ;;  %v589_v14 = vld [vmem:[%s745_s0] sm:$0xff]   ;;  %v213_v18 = vld [vmem:[%s746_s2 + $0x50] sm:$0xff]  ;;  %vm215_vm2 = vcmask 261120   ;;  %vm290_vm3 = vcmask 57344  }
   0x6   :  { %559 = vmatpush3.bf16.msra.mxu1 %v585_v3  ;;  %v602_v16 = vld [vmem:[%s744_s1 + $0x4] ss:$12 sps:$4 sm:$0xff]   ;;  %v604_v17 = vld [vmem:[%s744_s1] ss:$12 sps:$4 sm:$0xff]   ;;  %vm405_vm10 = vcmask 64512   ;;  %vm509_vm11 = vcmask 7168  }
   0x7   :  { %560 = vmatprep.subr.bf16.mxu1 %v611_v0  ;;  %v212_v19 = vld [vmem:[%s746_s2 + $0x40] sm:$0xff]  ;;  %v211_v20 = vld [vmem:[%s746_s2 + $0x30] sm:$0xff] }
   0x8   :  { %135 = vmatpush1.bf16.msra.mxu0 %v595_v9  ;;  %v210_v21 = vld [vmem:[%s746_s2 + $0x20] sm:$0xff]  ;;  %v207_v24 = vld [vmem:[%s746_s2 + $0x11] ss:$0 sm:$0xff]  ;;  %v214_v33 = vld [vmem:[%s746_s2 + $0x12] ss:$0 sm:$0xff] }
   0x9   :  { %136 = vmatprep.subr.bf16.mxu0 %v596_v10 }
   0xa   :  { %561 = vmatpush3.bf16.msra.mxu1 %v586_v4 }
   0xb   :  { %562 = vmatprep.subr.bf16.mxu1 %v611_v0 }
   0xc   :  { %137 = vmatpush1.bf16.msra.mxu0 %v598_v11 }
   0xd   :  { %138 = vmatprep.subr.bf16.mxu0 %v599_v13 }
   0xe   :  { %563 = vmatpush3.bf16.msra.mxu1 %v587_v8 }
   0xf   :  { %564 = vmatprep.subr.bf16.mxu1 %v611_v0 }
  0x10   :  { %139 = vmatpush1.bf16.msra.mxu0 %v601_v15 }
  0x11   :  { %140 = vmatprep.subr.bf16.mxu0 %v602_v16 }
  0x12   :  { %565 = vmatpush3.bf16.msra.mxu1 %v588_v12 }
  0x14   :  { %141 = vmatpush1.bf16.msra.mxu0 %v604_v17 }
  0x15   :  { %567 = vmatmul.mubr.msk.bf16.vlgmr.msra.gmra.mxu1 %vm122_vm1, %v589_v14  ;;  %570 = vmatprep.subr.mxu0 %v611_v0 }
  0x16   :  { %473 = vmatprep.mubr.f32.mxu1 %v611_v0 }
  0x17   :  { %531 = vmatmul.mubr.msk.bf16.vlgmr.msra.gmra.mxu0 %vm122_vm1, %v589_v14 }
  0x18   :  { %578 = vmatprep.mubr.msk.f32.mxu0 %vm612_vm0, %v611_v0  ;;  %571 = vmatpush3.msra.mxu0 %v213_v18 }
  0x19   :  { %572 = vmatprep.subr.mxu0 %v611_v0 }
  0x1a   :  { %573 = vmatpush3.msra.mxu0 %v212_v19 }
  0x1b   :  { %574 = vmatprep.subr.mxu0 %v611_v0 }
  0x1c   :  { %575 = vmatpush3.msra.mxu0 %v211_v20 }
  0x1d   :  { %576 = vmatprep.subr.mxu0 %v611_v0 }
  0x1e   :  { %577 = vmatpush3.msra.mxu0 %v210_v21 }
  0xd5   :  { %v201_v22 = vpop.f32.mrf.mxu1 }
  0xd7   :  { %v568_v23 = vpop.f32.mrf.mxu1  ;;  %v699_v29 = vpop.f32.mrf.mxu0 }
  0xd9   :  { %v203_v25 = vpop.f32.mrf.mxu1  ;;  %v701_v30 = vpop.f32.mrf.mxu0 }
  0xda   :  { %v208_v26 = vadd.f32 %v207_v24, %v203_v25 }
  0xdb   :  { %v569_v27 = vpop.f32.mrf.mxu1  ;;  %v164_v31 = vpop.f32.mrf.mxu0 }
  0xdc   :  { %v209_v28 = vmax.f32 %v208_v26, 0.0 }
  0xdd   :  { %v165_v32 = vpop.f32.mrf.mxu0 }
  0xde   :  { %579 = vmatmul.mubr.msk.f32.vlgmr.msra.gmra.mxu0 %vm215_vm2, %v209_v28 }
 0x19e   :  { %v285_v34 = vpop.f32.mrf.mxu0 }
 0x19f   :  { %v286_v35 = vadd.f32 %v285_v34, %v214_v33 }
 0x1a0   :  { %v580_v36 = vpop.f32.mrf.mxu0 }
 0x1a1   :  { %v706_v37 = vmul.f32 0.5, %v286_v35 }
 0x1a3   :  { %v291_v38 = vsel %vm290_vm3, %v706_v37, -inf }
 0x1a4   :  { %292 = vmax.xlane.f32.xlu0 %v291_v38 }
 0x22d   :  { %v293_v39 = vpop.xlane.xlu0 %292 }
 0x22e   :  { %v534_v40 = vadd.f32 -1.0, %v293_v39  ;;  %v535_v41 = vadd.f32 -0.35355338, %v293_v39 }
 0x230   :  { %v303_v42 = vsub.f32 %v535_v41, %v534_v40  ;;  %v296_v43 = vsub.f32 %v706_v37, %v534_v40 }
 0x232   :  { %v304_v44 = vmul.f32 0.5, %v303_v42  ;;  %v297_v45 = vmax.f32 %v296_v43, 0.0 }
 0x234   :  { %v298_v46 = vmul.f32 %v297_v45, %v297_v45  ;;  %v305_v47 = vadd.f32 %v534_v40, %v304_v44  ;;  %v316_v58 = vmul.f32 0.5, %v304_v44 }
 0x236   :  { %v299_v48 = vsel %vm290_vm3, %v298_v46, 0.0  ;;  %v306_v49 = vsub.f32 %v706_v37, %v305_v47  ;;  %v328_v4 = vmul.f32 0.5, %v316_v58 }
 0x237   :  { %300 = vadd.xlane.f32.xlu0 %v299_v48 }
 0x238   :  { %v307_v50 = vmax.f32 %v306_v49, 0.0  ;;  %v340_v14 = vmul.f32 0.5, %v328_v4 }
 0x23a   :  { %v308_v51 = vmul.f32 %v307_v50, %v307_v50  ;;  %v352_v24 = vmul.f32 0.5, %v340_v14 }
 0x23c   :  { %v309_v52 = vsel %vm290_vm3, %v308_v51, 0.0  ;;  %v364_v36 = vmul.f32 0.5, %v352_v24 }
 0x23d   :  { %310 = vadd.xlane.f32.xlu1 %v309_v52 }
 0x2c0   :  { %v301_v53 = vpop.xlane.xlu0 %300 }
 0x2c1   :  { %v536_v55 = vadd.f32 -1.0, %v301_v53 }
 0x2c6   :  { %v311_v54 = vpop.xlane.xlu1 %310 }
 0x2c7   :  { %v537_v56 = vadd.f32 -1.0, %v311_v54  ;;  %v404_v54 = vld [vmem:[%s746_s2 + $0x8] sm:$0xff] }
 0x2c8   :  { %439 = vmatprep.subr.mxu1 %v404_v54 }
 0x2c9   :  { %v313_v57 = vmul.f32 %v537_v56, %v536_v55  ;;  %v403_v56 = vld [vmem:[%s746_s2] sm:$0xff] }
 0x2ca   :  { %440 = vmatpush1.msra.mxu1 %v403_v56 }
 0x2cb   :  { %vm314_vm4 = vcmp.ge.f32.partialorder %v313_v57, 0.0 }
 0x2cc   :  { %v315_v59 = vsel %vm314_vm4, %v305_v47, %v534_v40  ;;  %v376_v47 = vmul.f32 0.5, %v364_v36 }
 0x2cd   :  { %v317_v60 = vadd.f32 %v316_v58, %v315_v59 }
 0x2cf   :  { %v318_v61 = vsub.f32 %v706_v37, %v317_v60 }
 0x2d1   :  { %v319_v62 = vmax.f32 %v318_v61, 0.0  ;;  %v389_v61 = vlaneseq }
 0x2d3   :  { %v320_v63 = vmul.f32 %v319_v62, %v319_v62  ;;  %v390_v62 = vshrl.u32 %v389_v61, 7 }
 0x2d5   :  { %v321_v0 = vsel %vm290_vm3, %v320_v63, 0.0  ;;  %v391_v63 = vsub.s32 0, %v390_v62 }
 0x2d6   :  { %322 = vadd.xlane.f32.xlu1 %v321_v0  ;;  %v395_v0 = vsub.s32 1, %v390_v62 }
 0x35f   :  { %v323_v1 = vpop.xlane.xlu1 %322 }
 0x360   :  { %v538_v2 = vadd.f32 -1.0, %v323_v1  ;;  %v543_v1 = vld [vmem:[%s746_s2 + $0x10] ss:$8 sm:$0x3] }
 0x362   :  { %v325_v3 = vmul.f32 %v538_v2, %v536_v55  ;;  %v392_v2 = vrot.slane %v543_v1, %v391_v63 }
 0x364   :  { %vm326_vm5 = vcmp.ge.f32.partialorder %v325_v3, 0.0  ;;  %v396_v3 = vrot.slane %v543_v1, %v395_v0 }
 0x365   :  { %v327_v5 = vsel %vm326_vm5, %v317_v60, %v315_v59 }
 0x366   :  { %v329_v6 = vadd.f32 %v328_v4, %v327_v5  ;;  %v399_v4 = vadd.f32 %v392_v2, %v699_v29 }
 0x368   :  { %v330_v7 = vsub.f32 %v706_v37, %v329_v6 }
 0x36a   :  { %v331_v8 = vmax.f32 %v330_v7, 0.0 }
 0x36c   :  { %v332_v9 = vmul.f32 %v331_v8, %v331_v8 }
 0x36e   :  { %v333_v10 = vsel %vm290_vm3, %v332_v9, 0.0  ;;  %v401_v9 = vmax.f32 %v399_v4, 0.0 }
 0x36f   :  { %334 = vadd.xlane.f32.xlu0 %v333_v10 }
 0x3f8   :  { %v335_v11 = vpop.xlane.xlu0 %334 }
 0x3f9   :  { %v539_v12 = vadd.f32 -1.0, %v335_v11 }
 0x3fb   :  { %v337_v13 = vmul.f32 %v539_v12, %v536_v55 }
 0x3fd   :  { %vm338_vm6 = vcmp.ge.f32.partialorder %v337_v13, 0.0 }
 0x3fe   :  { %v339_v15 = vsel %vm338_vm6, %v329_v6, %v327_v5  ;;  %v400_v5 = vadd.f32 %v396_v3, %v701_v30 }
 0x3ff   :  { %v341_v16 = vadd.f32 %v340_v14, %v339_v15 }
 0x400   :  { %v402_v10 = vmax.f32 %v400_v5, 0.0 }
 0x401   :  { %v342_v17 = vsub.f32 %v706_v37, %v341_v16 }
 0x403   :  { %v343_v18 = vmax.f32 %v342_v17, 0.0 }
 0x405   :  { %v344_v19 = vmul.f32 %v343_v18, %v343_v18 }
 0x407   :  { %v345_v20 = vsel %vm290_vm3, %v344_v19, 0.0 }
 0x408   :  { %346 = vadd.xlane.f32.xlu1 %v345_v20 }
 0x491   :  { %v347_v21 = vpop.xlane.xlu1 %346 }
 0x492   :  { %v540_v22 = vadd.f32 -1.0, %v347_v21 }
 0x494   :  { %v349_v23 = vmul.f32 %v540_v22, %v536_v55 }
 0x496   :  { %vm350_vm7 = vcmp.ge.f32.partialorder %v349_v23, 0.0 }
 0x497   :  { %v351_v25 = vsel %vm350_vm7, %v341_v16, %v339_v15 }
 0x498   :  { %v353_v26 = vadd.f32 %v352_v24, %v351_v25 }
 0x49a   :  { %v354_v27 = vsub.f32 %v706_v37, %v353_v26 }
 0x49c   :  { %v355_v28 = vmax.f32 %v354_v27, 0.0 }
 0x49e   :  { %v356_v31 = vmul.f32 %v355_v28, %v355_v28 }
 0x4a0   :  { %v357_v32 = vsel %vm290_vm3, %v356_v31, 0.0 }
 0x4a1   :  { %358 = vadd.xlane.f32.xlu0 %v357_v32 }
 0x52a   :  { %v359_v33 = vpop.xlane.xlu0 %358 }
 0x52b   :  { %v541_v34 = vadd.f32 -1.0, %v359_v33 }
 0x52d   :  { %v361_v35 = vmul.f32 %v541_v34, %v536_v55 }
 0x52f   :  { %vm362_vm8 = vcmp.ge.f32.partialorder %v361_v35, 0.0 }
 0x530   :  { %v363_v38 = vsel %vm362_vm8, %v353_v26, %v351_v25 }
 0x531   :  { %v365_v39 = vadd.f32 %v364_v36, %v363_v38 }
 0x533   :  { %v366_v40 = vsub.f32 %v706_v37, %v365_v39 }
 0x535   :  { %v367_v41 = vmax.f32 %v366_v40, 0.0 }
 0x537   :  { %v368_v42 = vmul.f32 %v367_v41, %v367_v41 }
 0x539   :  { %v369_v43 = vsel %vm290_vm3, %v368_v42, 0.0 }
 0x53a   :  { %370 = vadd.xlane.f32.xlu1 %v369_v43 }
 0x5c3   :  { %v371_v44 = vpop.xlane.xlu1 %370 }
 0x5c4   :  { %v542_v45 = vadd.f32 -1.0, %v371_v44 }
 0x5c6   :  { %v373_v46 = vmul.f32 %v542_v45, %v536_v55 }
 0x5c8   :  { %vm374_vm9 = vcmp.ge.f32.partialorder %v373_v46, 0.0 }
 0x5c9   :  { %v375_v48 = vsel %vm374_vm9, %v365_v39, %v363_v38 }
 0x5ca   :  { %v377_v49 = vadd.f32 %v376_v47, %v375_v48 }
 0x5cc   :  { %v378_v50 = vsub.f32 %v706_v37, %v377_v49  ;;  %v480_v37 = vld [vmem:[%s746_s2 + $0x13] ss:$0 sm:$0xff] }
 0x5ce   :  { %v379_v51 = vmax.f32 %v378_v50, 0.0 }
 0x5d0   :  { %v380_v52 = vmul.f32 %v379_v51, %v379_v51 }
 0x5d2   :  { %v381_v53 = vsel %vm290_vm3, %v380_v52, 0.0 }
 0x5d3   :  { %382 = vadd.xlane.f32.xlu0 %v381_v53 }
 0x65c   :  { %v383_v55 = vpop.xlane.xlu0 %382 }
 0x65d   :  { %605 = vrcp.f32 %v383_v55 }
 0x66a   :  { %v606_v57 = vpop.eup %605 }
 0x66b   :  { %v385_v58 = vmul.f32 %v606_v57, %v380_v52 }
 0x66d   :  { %544 = vmatmul.mubr.msk.f32.vlgmr.msra.gmra.mxu1 %vm405_vm10, %v385_v58  ;;  %v481_v59 = vmul.f32 %v480_v37, %v385_v58 }
 0x66f   :  { %v482_v60 = vsel %vm290_vm3, %v481_v59, 0.0 }
 0x670   :  { %483 = vadd.xlane.f32.xlu1 %v482_v60 }
 0x6f9   :  { %v484_v15 = vpop.xlane.xlu1 %483 }
 0x6fa   :  { %v501_v16 = vrot.slane %v484_v15, %v391_v63 }
 0x72d   :  { %v475_v6 = vpop.f32.mrf.mxu1 }
 0x72e   :  { %v488_v7 = vrot.slane %v475_v6, %v391_v63 }
 0x72f   :  { %v477_v8 = vpop.f32.mrf.mxu1 }
 0x730   :  { %v492_v11 = vrot.slane %v477_v8, %v391_v63  ;;  %v493_v12 = vmul.f32 %v488_v7, %v401_v9 }
 0x732   :  { %v494_v13 = vmul.f32 %v492_v11, %v402_v10 }
 0x734   :  { %v495_v14 = vadd.f32 %v494_v13, %v493_v12 }
 0x736   :  { %496 = vadd.xlane.f32.xlu0 %v495_v14 }
 0x7bf   :  { %v497_v17 = vpop.xlane.xlu0 %496 }
 0x7c0   :  { %v502_v18 = vadd.f32 %v501_v16, %v497_v17 }
 0x7c2   :  { %v503_v19 = vsub.f32 0.0, %v502_v18 }
 0x7c4   :  { %v504_v20 = vmul.f32 1.442695, %v503_v19 }
 0x7c6   :  { %607 = vpow2.f32 %v504_v20 }
 0x7d3   :  { %v608_v29 = vpop.eup %607 }
 0x7d4   :  { %v506_v21 = vadd.f32 1.0, %v608_v29 }
 0x7d6   :  { %609 = vrcp.f32 %v506_v21 }
 0x7e3   :  { %v610_v30 = vpop.eup %609 }
 0x7e4   :  { %510 = vst.msk [vmem:[%s747_s3] sm:$0xff] %vm509_vm11, %v610_v30 }

</bundles_post_ra>
